<compile_context>
chip_gen: v5e
topology: v5e:2x2
jax: 0.10.0
libtpu: 0.0.40
codegen_flags: <defaults>
</compile_context>

<pallas_src>
import jax
import jax.numpy as jnp
from jax.experimental import pallas as pl
from jax.experimental.pallas import tpu as pltpu

EPS = 1e-5
LPAD = 8                        # halo width in the padded conv scratch (sublane-aligned interior)
VMEM_LIMIT = 64 * 1024 * 1024   # raise scoped-VMEM default; <= v7x physical (64 MiB)


# --------------------------------------------------------------------- in-kernel helpers

def _zero_halo(xp_ref, n, h, w):
    """Zero only the halo ring of the padded scratch: two aligned 8-sublane column blocks and
    the top/bottom rows.  The interior is rewritten before every conv, so it is never zeroed."""
    wp, c = xp_ref.shape[2], xp_ref.shape[3]
    dt = xp_ref.dtype
    xp_ref[:, :, 0:LPAD, :] = jnp.zeros((n, h + 2, LPAD, c), dt)
    xp_ref[:, :, LPAD + w:wp, :] = jnp.zeros((n, h + 2, wp - LPAD - w, c), dt)
    xp_ref[:, 0:1, :, :] = jnp.zeros((n, 1, wp, c), dt)
    xp_ref[:, h + 1:h + 2, :, :] = jnp.zeros((n, 1, wp, c), dt)


def _conv3x3_acc(xp_ref, wslice, n, h, w):
    """3x3 conv (padding via the zero-haloed bf16 scratch) as tap-pair-accumulated MXU matmuls.

    xp_ref : VMEM ref (n, h+2, w+2*LPAD, cin) bf16, interior at columns [LPAD, LPAD+w)
    wslice : wslice(r0, r1) -> bf16 weight rows [r0, r1) of the (9*cin, cout) im2col layout,
             rows ordered (kh*3 + kw)*cin + ci
    returns: (n*h*w, cout) f32 accumulator.

    Adjacent taps are paired so most dots have K = 2*cin (better MXU K-occupancy on v6e/v7x);
    only a 2-tap window is in flight at a time instead of the old 9-wide (M, 9*cin) slab.
    """
    cin = xp_ref.shape[-1]
    m = n * h * w
    acc = None
    t = 0
    while t < 9:
        npair = min(2, 9 - t)
        wins = []
        for q in range(npair):
            kh, kw = divmod(t + q, 3)
            wins.append(
                xp_ref[:, kh:kh + h, LPAD + kw - 1:LPAD + kw - 1 + w, :].reshape(m, cin))
        lhs = wins[0] if npair == 1 else jnp.concatenate(wins, axis=-1)      # (m, npair*cin) bf16
        contrib = jnp.dot(lhs, wslice(t * cin, (t + npair) * cin),
                          preferred_element_type=jnp.float32)
        acc = contrib if acc is None else acc + contrib
        t += npair
    return acc


def _bn_coeffs(y2d, gamma, beta):
    """Training-mode BatchNorm2d folded to per-channel (scale, shift).
    Single pass over y (sum and sum-of-squares), biased variance, f32 stats."""
    m = jnp.mean(y2d, axis=0, keepdims=True)
    ex2 = jnp.mean(y2d * y2d, axis=0, keepdims=True)
    var = jnp.maximum(ex2 - m * m, 0.0)
    scale = gamma * jax.lax.rsqrt(var + EPS)
    shift = beta - m * scale
    return scale, shift


def _bilinear_up2(x, n, h, w, c):
    """2x bilinear upsample (align_corners=False) by shift + interleave only (no matmul).

    H: clamped shifts + interleave on a major axis (free reshape).
    W: clamped sublane shifts + lane concat + ONE minor reshape (row-major layout makes the
    lane concat an exact column interleave) -> work lands on the XLU/VPU, the MXU stays free."""
    xu_ = jnp.concatenate([x[:, :1], x[:, :h - 1]], axis=1)        # x[max(j-1, 0)]
    xd_ = jnp.concatenate([x[:, 1:], x[:, h - 1:]], axis=1)        # x[min(j+1, h-1)]
    xh = jnp.stack([0.75 * x + 0.25 * xu_,                         # out rows 2j
                    0.75 * x + 0.25 * xd_], axis=2)                # out rows 2j+1
    xh = xh.reshape(n, 2 * h, w, c)
    xl = jnp.concatenate([xh[:, :, :1], xh[:, :, :w - 1]], axis=2)
    xr = jnp.concatenate([xh[:, :, 1:], xh[:, :, w - 1:]], axis=2)
    # even/odd output columns interleaved: concat along lanes then reshape (2j <- even, 2j+1 <- odd)
    return jnp.concatenate([0.75 * xh + 0.25 * xl,
                            0.75 * xh + 0.25 * xr], axis=-1).reshape(n, 2 * h, 2 * w, c)


# --------------------------------------------------------------------- kernels

def embed_relu_kernel(s_ref, w_ref, o_ref):
    # relu(s @ W): bf16 operands on the MXU, f32 accumulate + f32 relu.  W columns are
    # pre-permuted (c,h,w)->(h,w,c) so the flat output reshapes into NHWC outside (free view).
    o_ref[...] = jnp.maximum(
        jnp.dot(s_ref[...].astype(jnp.bfloat16), w_ref[...],
                preferred_element_type=jnp.float32), 0.0)


def res_tower_kernel(x_ref, w1_ref, g1_ref, b1_ref, w2_ref, g2_ref, b2_ref, o_ref, xp_ref):
    # One grid step == one residual Block.  o_ref has a constant block index across the grid,
    # so the f32 activation stays VMEM-resident and is written back to HBM only once.
    n, h, w, c = o_ref.shape

    @pl.when(pl.program_id(0) == 0)
    def _():
        o_ref[...] = x_ref[...]
        _zero_halo(xp_ref, n, h, w)          # halo zeroed once for all 9 blocks

    x = o_ref[...]
    # conv1 -> BN -> relu  (conv input cast once into the bf16 scratch, aligned interior store)
    xp_ref[:, 1:h + 1, LPAD:LPAD + w, :] = x.astype(xp_ref.dtype)
    y1 = _conv3x3_acc(xp_ref, lambda r0, r1: w1_ref[0, r0:r1, :], n, h, w)
    s1, t1 = _bn_coeffs(y1, g1_ref[0], b1_ref[0])
    a1 = jnp.maximum(y1 * s1 + t1, 0.0)
    # conv2 -> BN -> +residual -> relu  (fused epilogue, no HBM round-trip)
    xp_ref[:, 1:h + 1, LPAD:LPAD + w, :] = a1.reshape(n, h, w, c).astype(xp_ref.dtype)
    y2 = _conv3x3_acc(xp_ref, lambda r0, r1: w2_ref[0, r0:r1, :], n, h, w)
    s2, t2 = _bn_coeffs(y2, g2_ref[0], b2_ref[0])
    r = jnp.maximum(x.reshape(n * h * w, c) + (y2 * s2 + t2), 0.0)
    o_ref[...] = r.reshape(n, h, w, c)


def upsample_conv_bn_relu_kernel(x_ref, w_ref, g_ref, b_ref, o_ref, xp_ref):
    # bilinear 2x (shift + interleave) + conv3x3 + BN + relu, fused in one kernel.
    n, h, w, cin = x_ref.shape
    h2, w2 = 2 * h, 2 * w
    cout = o_ref.shape[-1]
    _zero_halo(xp_ref, n, h2, w2)
    xu = _bilinear_up2(x_ref[...], n, h, w, cin)
    xp_ref[:, 1:h2 + 1, LPAD:LPAD + w2, :] = xu.astype(xp_ref.dtype)
    y = _conv3x3_acc(xp_ref, lambda r0, r1: w_ref[r0:r1, :], n, h2, w2)
    s, t = _bn_coeffs(y, g_ref[...], b_ref[...])
    o_ref[...] = jnp.maximum(y * s + t, 0.0).reshape(n, h2, w2, cout)


def upsample_final_kernel(x_ref, w_ref, g_ref, b_ref, fw_ref, cb_ref, pb_ref,
                          o_ref, xp_ref, fp_ref):
    # bilinear 2x + conv3x3 + BN + relu, then the fused final head
    # (conv3x3 + conv bias + learned per-pixel bias + tanh): the (N,32,32,cap/2) activation
    # never touches HBM.
    n, h, w, cin = x_ref.shape
    h2, w2 = 2 * h, 2 * w
    cmid = g_ref.shape[-1]
    _zero_halo(xp_ref, n, h2, w2)
    _zero_halo(fp_ref, n, h2, w2)
    xu = _bilinear_up2(x_ref[...], n, h, w, cin)
    xp_ref[:, 1:h2 + 1, LPAD:LPAD + w2, :] = xu.astype(xp_ref.dtype)
    y = _conv3x3_acc(xp_ref, lambda r0, r1: w_ref[r0:r1, :], n, h2, w2)
    s, t = _bn_coeffs(y, g_ref[...], b_ref[...])
    a = jnp.maximum(y * s + t, 0.0)                                   # (n*h2*w2, cmid) f32
    fp_ref[:, 1:h2 + 1, LPAD:LPAD + w2, :] = a.reshape(n, h2, w2, cmid).astype(fp_ref.dtype)
    z = _conv3x3_acc(fp_ref, lambda r0, r1: fw_ref[r0:r1, :], n, h2, w2) + cb_ref[...]
    o_ref[...] = jnp.tanh(z.reshape(n, h2, w2, 3) + pb_ref[...])
    # TODO(synk): 3-lane NHWC output store is masked; lane-dense (N,3,H*W) NCHW emission needs an
    # in-kernel minor transpose of the small (M,3) slab - kept as a cheap XLA transpose outside.


# --------------------------------------------------------------------- pallas_call wrappers

def embed_relu(s, w_hwc):
    n, d = s.shape[0], w_hwc.shape[1]
    return pl.pallas_call(
        embed_relu_kernel,
        out_shape=jax.ShapeDtypeStruct((n, d), jnp.float32),
    )(s, w_hwc)


def res_tower(x, tw):
    n, h, w, c = x.shape
    nblk = tw["w1"].shape[0]
    act_spec = pl.BlockSpec((n, h, w, c), lambda i: (0, 0, 0, 0))   # constant -> VMEM-resident
    wspec = pl.BlockSpec((1, 9 * c, c), lambda i: (i, 0, 0))        # per-block conv weight
    gspec = pl.BlockSpec((1, 1, c), lambda i: (i, 0, 0))            # per-block BN gamma/beta
    return pl.pallas_call(
        res_tower_kernel,
        grid=(nblk,),
        in_specs=[act_spec, wspec, gspec, gspec, wspec, gspec, gspec],
        out_specs=act_spec,
        out_shape=jax.ShapeDtypeStruct((n, h, w, c), jnp.float32),
        scratch_shapes=[pltpu.VMEM((n, h + 2, w + 2 * LPAD, c), jnp.bfloat16)],
        compiler_params=pltpu.CompilerParams(
            dimension_semantics=("arbitrary",), vmem_limit_bytes=VMEM_LIMIT),
    )(x, tw["w1"], tw["g1"], tw["b1"], tw["w2"], tw["g2"], tw["b2"])


def upsample_stage(x, up):
    n, h, w, cin = x.shape
    cout = up["w"].shape[-1]
    return pl.pallas_call(
        upsample_conv_bn_relu_kernel,
        out_shape=jax.ShapeDtypeStruct((n, 2 * h, 2 * w, cout), jnp.float32),
        scratch_shapes=[pltpu.VMEM((n, 2 * h + 2, 2 * w + 2 * LPAD, cin), jnp.bfloat16)],
        compiler_params=pltpu.CompilerParams(vmem_limit_bytes=VMEM_LIMIT),
    )(x, up["w"], up["g"], up["b"])


def upsample_final_stage(x, up, img_w, img_b, bias_hwc):
    n, h, w, cin = x.shape
    cmid = up["w"].shape[-1]
    h2, w2 = 2 * h, 2 * w
    return pl.pallas_call(
        upsample_final_kernel,
        out_shape=jax.ShapeDtypeStruct((n, h2, w2, 3), jnp.float32),
        scratch_shapes=[pltpu.VMEM((n, h2 + 2, w2 + 2 * LPAD, cin), jnp.bfloat16),
                        pltpu.VMEM((n, h2 + 2, w2 + 2 * LPAD, cmid), jnp.bfloat16)],
        compiler_params=pltpu.CompilerParams(vmem_limit_bytes=VMEM_LIMIT),
    )(x, up["w"], up["g"], up["b"], img_w, img_b, bias_hwc)


# --------------------------------------------------------------------- params / model

def init_params(key, seed_size, capacity):
    """Parameters stored in kernel-friendly packed layouts (matmul weights bf16)."""
    def normal(k, shape):
        return (0.05 * jax.random.normal(k, shape)).astype(jnp.float32)

    def conv_w(k, cin, cout):
        # torch Conv2d weight (cout,cin,3,3) -> im2col rows ((kh*3+kw)*cin + ci, cout), bf16
        w = jnp.transpose(normal(k, (cout, cin, 3, 3)), (2, 3, 1, 0)).reshape(9 * cin, cout)
        return w.astype(jnp.bfloat16)

    keys = iter(jax.random.split(key, 64))
    cap = capacity

    # Linear(seed, cap*8*8, bias=False).  torch weight is (out, in); store the transpose with
    # columns permuted (c*64 + h*8 + w) -> ((h*8 + w)*cap + c) so the output is NHWC-flat.
    w_embed_t = normal(next(keys), (seed_size, cap * 8 * 8))
    w_embed_hwc = jnp.transpose(
        w_embed_t.reshape(seed_size, cap, 8, 8), (0, 2, 3, 1)
    ).reshape(seed_size, 64 * cap).astype(jnp.bfloat16)

    tower = {k: [] for k in ("w1", "g1", "b1", "w2", "g2", "b2")}
    for _ in range(9):
        tower["w1"].append(conv_w(next(keys), cap, cap))
        tower["g1"].append(normal(next(keys), (1, cap)))       # BN weight ~ N(0,.05) per torch init
        tower["b1"].append(jnp.zeros((1, cap), jnp.float32))
        tower["w2"].append(conv_w(next(keys), cap, cap))
        tower["g2"].append(normal(next(keys), (1, cap)))
        tower["b2"].append(jnp.zeros((1, cap), jnp.float32))
    tower = {k: jnp.stack(v, axis=0) for k, v in tower.items()}    # (9, ...) for grid indexing

    up1 = {"w": conv_w(next(keys), cap, cap),
           "g": normal(next(keys), (1, cap)), "b": jnp.zeros((1, cap), jnp.float32)}
    up2 = {"w": conv_w(next(keys), cap, cap // 2),
           "g": normal(next(keys), (1, cap // 2)), "b": jnp.zeros((1, cap // 2), jnp.float32)}

    return {
        "capacity": cap,
        "embed_w": w_embed_hwc,
        "tower": tower,
        "up1": up1,
        "up2": up2,
        "img_w": conv_w(next(keys), cap // 2, 3),
        "img_b": jnp.zeros((1, 3), jnp.float32),                  # torch Conv2d bias: init 0
        "bias_hwc": jnp.zeros((1, 32, 32, 3), jnp.float32),       # torch self.bias (3,32,32), HWC
    }


def generator_forward(params, s):
    cap = params["capacity"]
    n = s.shape[0]
    z = embed_relu(s, params["embed_w"])                 # (N, 64*cap) f32, already (h,w,c)-ordered
    zx = z.reshape(n, 8, 8, cap)                         # free view -> NHWC
    zx = res_tower(zx, params["tower"])                  # 9 residual blocks, one fused kernel
    zx = upsample_stage(zx, params["up1"])               # (N, 16, 16, cap)
    out = upsample_final_stage(zx, params["up2"], params["img_w"], params["img_b"],
                               params["bias_hwc"])       # (N, 32, 32, 3), tanh'd
    return jnp.transpose(out, (0, 3, 1, 2))              # single XLA transpose to PyTorch NCHW


# --------------------------------------------------------------------- main

if __name__ == "__main__":
    SEED_SIZE = 16
    CAPACITY = 8      # small stand-in for the default 128 (must be even)
    BATCH = 2

    key = jax.random.PRNGKey(0)
    k_param, k_input = jax.random.split(key)
    params = init_params(k_param, SEED_SIZE, CAPACITY)
    s = jax.random.normal(k_input, (BATCH, SEED_SIZE), dtype=jnp.float32)

    out = jax.block_until_ready(generator_forward(params, s))

    assert out.shape == (BATCH, 3, 32, 32), out.shape
    assert bool(jnp.all(jnp.isfinite(out)))
    assert bool(jnp.all(jnp.abs(out) <= 1.0))   # tanh range
    print("KERNEL_OK")
</pallas_src>

<mosaic_0001>
module attributes {stable_mosaic.version = 11 : i64} {
  func.func @embed_relu_kernel(%arg0: memref<2x16xf32, #tpu.memory_space<vmem>>, %arg1: memref<16x512xbf16, #tpu.memory_space<vmem>>, %arg2: memref<2x512xf32, #tpu.memory_space<vmem>>) attributes {dimension_semantics = [], scalar_prefetch = 0 : i64, scratch_operands = 0 : i64, tpu.core_type = #tpu.core_type<tc>} {
    %c0 = arith.constant 0 : index
    %c0_0 = arith.constant 0 : index
    %0 = vector.load %arg0[%c0, %c0_0] : memref<2x16xf32, #tpu.memory_space<vmem>>, vector<2x16xf32>
    %1 = arith.truncf %0 : vector<2x16xf32> to vector<2x16xbf16>
    %c0_1 = arith.constant 0 : index
    %c0_2 = arith.constant 0 : index
    %2 = vector.load %arg1[%c0_1, %c0_2] : memref<16x512xbf16, #tpu.memory_space<vmem>>, vector<16x512xbf16>
    %cst = arith.constant dense<0.000000e+00> : vector<2x512xf32>
    %3 = tpu.matmul %1, %2, %cst {dimension_numbers = #tpu.dot_dimension_numbers<[1], [0], [0], [1], [0, 0, 1, 1], [], []>} : vector<2x16xbf16>, vector<16x512xbf16>, vector<2x512xf32> -> vector<2x512xf32>
    %cst_3 = arith.constant 0.000000e+00 : f32
    %4 = vector.broadcast %cst_3 : f32 to vector<2x512xf32>
    %5 = arith.maximumf %3, %4 : vector<2x512xf32>
    %c0_4 = arith.constant 0 : index
    %c0_5 = arith.constant 0 : index
    %6 = vector.load %arg2[%c0_4, %c0_5] : memref<2x512xf32, #tpu.memory_space<vmem>>, vector<2x512xf32>
    tpu.vector_store %arg2[%c0_4, %c0_5], %5 {strides = array<i32>} : memref<2x512xf32, #tpu.memory_space<vmem>>, vector<2x512xf32>,
    return
  }
}

</mosaic_0001>

<bundles_post_ra>
// kernel: tpu_custom_call.1
= control target key start
LH: loop header
LB: loop body
LE: loop exit
PB: predicated region body
PF: predicated region fallthrough
CT: control target
= control target key end

     0   :  { %7 = vsyncpa [#allocation3], 0  ;;  %s298_s0 = inlined_call_operand.hbm [shape: f32[2,16], index: 0, kind: input, shape index: {}]   ;;  %s299_s1 = inlined_call_operand.hbm [shape: bf16[16,512], index: 1, kind: input, shape index: {}]   ;;  %s300_s2 = inlined_call_operand.hbm [shape: f32[2,512], index: 2, kind: output, shape index: {}]  }
   0x1   :  { %8 = vsyncpa [#allocation6], 0 }
   0x2   :  { %9 = vsyncpa [#allocation4], 0  ;;  %s15_s11 = sshll.u32 %s298_s0, 4  ;;  %s269_s12 = smov [#allocation2]   ;;  %s16_s11 = int_to_ptr.hbm [resolvable:$true] %s15_s11 }
   0x3   :  { %s17_s13 = sshll.u32 %s269_s12, 4  ;;  %s25_s16 = sshll.u32 %s299_s1, 4  ;;  %s18_s13 = int_to_ptr.vmem [resolvable:$true] %s17_s13  ;;  %s26_s16 = int_to_ptr.hbm [resolvable:$true] %s25_s16 }
   0x4   :  { %20 = dma.hbm_to_vmem [thread:$0]  %s16_s11, 32, %s18_s13, [#allocation3]  }
   0x5   :  { %s270_s17 = smov [#allocation5]   ;;  %s271_s19 = smov 256  }
   0x6   :  { %s27_s18 = sshll.u32 %s270_s17, 4  ;;  %s272_s20 = smov 16   ;;  %s28_s18 = int_to_ptr.vmem [resolvable:$true] %s27_s18 }
   0x7   :  { %33 = dma.hbm_to_vmem [thread:$0]  %s26_s16, 512, %s28_s18, [#allocation6], %s271_s19, %s271_s19, %s272_s20  }
   0x8   :  { %263 = dma.done.wait [#allocation3], 32  }
   0x9   :  { %264 = vsyncadd [#allocation3], 4294967264 }
   0xa   :  { %265 = dma.done.wait [#allocation6], 512  }
   0xb   :  { %266 = vsyncadd [#allocation6], 4294966784  ;;  %v164_v0 = vld [vmem:[#allocation5] sm:$0xf]  ;;  %v184_v1 = vld [vmem:[#allocation5 + $0xc] sm:$0xf0] }
   0xc   :  { %v182_v2 = vld [vmem:[#allocation5 + $0x4] sm:$0xf]  ;;  %v165_v3 = vor.u32 %v184_v1, %v164_v0  ;;  %v166_v4 = vld [vmem:[#allocation5 + $0x10] sm:$0xf0]  ;;  %v172_v5 = vld [vmem:[#allocation5 + $0x8] sm:$0xf] }
   0xd   :  { %v185_v6 = vld [vmem:[#allocation5 + $0x14] sm:$0xf0]  ;;  %v169_v7 = vor.u32 %v182_v2, %v166_v4  ;;  %v183_v9 = vld [vmem:[#allocation5 + $0xc] sm:$0xf]  ;;  %v174_v10 = vld [vmem:[#allocation5 + $0x18] sm:$0xf0] }
   0xe   :  { %v173_v8 = vor.u32 %v185_v6, %v172_v5  ;;  %v43_v11 = vld [vmem:[#allocation2] sm:$0x3]  ;;  %80 = vmatpush.bf16.msra.mxu0 %v165_v3  ;;  %v177_v12 = vor.u32 %v183_v9, %v174_v10  ;;  %vm69_vm0 = vcmask 130048   ;;  %vm136_vm1 = vcmask 1041408   ;;  %s273_s0 = smov [#allocation7]   ;;  %s151_s23 = sshll.u32 %s300_s2, 4  ;;  %s152_s23 = int_to_ptr.hbm [resolvable:$true] %s151_s23 }
   0xf   :  { %v44_v13 = vpack.c.bf16 %v43_v11, %v43_v11  ;;  %93 = vmatpush.bf16.msra.mxu1 %v169_v7  ;;  %vm138_vm2 = vcmask 1045508   ;;  %s149_s1 = sshll.u32 %s273_s0, 4  ;;  %vm140_vm3 = vcmask 1043456   ;;  %s150_s1 = int_to_ptr.vmem [resolvable:$true] %s149_s1 }
  0x10   :  { %106 = vmatpush.bf16.msra.mxu2 %v173_v8  ;;  %119 = vmatpush.bf16.msra.mxu3 %v177_v12 }
  0x11   :  { %178 = vmatmul.msk.bf16.vlgmr.msra.gmra.mxu0 %vm69_vm0, %v44_v13 }
  0x12   :  { %179 = vmatmul.msk.bf16.vlgmr.msra.gmra.mxu1 %vm69_vm0, %v44_v13 }
  0x13   :  { %180 = vmatmul.msk.bf16.vlgmr.msra.gmra.mxu2 %vm69_vm0, %v44_v13  ;;  %181 = vmatmul.msk.bf16.vlgmr.msra.gmra.mxu3 %vm69_vm0, %v44_v13 }
  0x8e   :  { %v82_v14 = vpop.f32.mrf.mxu0 }
  0x8f   :  { %v95_v15 = vpop.f32.mrf.mxu1  ;;  %v125_v21 = vmax.f32 %v82_v14, 0.0 }
  0x90   :  { %v126_v16 = vmax.f32 %v95_v15, 0.0 }
  0x92   :  { %v133_v22 = vrot.slane %v126_v16, 6 }
  0x94   :  { %v137_v27 = vsel %vm136_vm1, %v125_v21, %v133_v22 }
  0x96   :  { %v108_v17 = vpop.f32.mrf.mxu2  ;;  %v121_v19 = vpop.f32.mrf.mxu3 }
  0x97   :  { %v127_v18 = vmax.f32 %v108_v17, 0.0  ;;  %v84_v20 = vpop.f32.mrf.mxu0  ;;  %v128_v23 = vmax.f32 %v121_v19, 0.0  ;;  %v97_v24 = vpop.f32.mrf.mxu1 }
  0x99   :  { %v134_v25 = vrot.slane %v127_v18, 4  ;;  %v135_v26 = vrot.slane %v128_v23, 2 }
  0x9b   :  { %v139_v28 = vsel %vm138_vm2, %v134_v25, %v135_v26 }
  0x9c   :  { %v141_v29 = vsel %vm140_vm3, %v137_v27, %v139_v28 }
  0x9d   :  { %143 = vst [vmem:[#allocation7] sm:$0xff] %v141_v29 }
  0x9e   :  { %v110_v30 = vpop.f32.mrf.mxu2  ;;  %v123_v31 = vpop.f32.mrf.mxu3  ;;  %154 = dma.vmem_to_hbm [thread:$0]  %s150_s1, 128, %s152_s23, [#allocation4]  }
  0x9f   :  { %267 = dma.done.wait [#allocation4], 128  }
  0xa0   :  { %268 = vsyncadd [#allocation4], 4294967168 }
  0xa1   :  { %159 = vsyncpa [#allocation3], 1 }
  0xa2   :  { %160 = vsyncpa [#allocation6], 1 }
  0xa3   :  { %161 = vsyncpa [#allocation4], 1 }

</bundles_post_ra>
